<compile_context>
chip_gen: v7x
topology: tpu7x:2x2x1
jax: 0.10.0
libtpu: 0.0.40
codegen_flags: <defaults>
</compile_context>

<pallas_src>
import functools
import numpy as np
import jax
import jax.numpy as jnp
from jax.experimental import pallas as pl
from jax.experimental.pallas import tpu as pltpu


# ------------------------------- Pallas kernel ------------------------------ #

def _mlp_ln_kernel(y_ref, w1_ref, b1_ref, w2_ref, b2_ref, g_ref, beta_ref,
                   o_ref, acc_ref, *, eps):
    j = pl.program_id(1)

    @pl.when(j == 0)
    def _init():
        acc_ref[...] = jnp.zeros_like(acc_ref)

    y = y_ref[...]

    # ---- fc1 chunk + ReLU (MXU, f32 accumulation). Weights already in compute
    #      dtype (pre-cast once in the wrapper); only the per-tile activation casts
    #      happen here.
    h = jnp.dot(y.astype(w1_ref.dtype), w1_ref[...],
                preferred_element_type=jnp.float32)
    h = jnp.maximum(h + b1_ref[...].astype(jnp.float32), 0.0)

    # ---- fc2 chunk accumulated into the f32 VMEM scratch (no HBM round trip).
    acc_ref[...] += jnp.dot(h.astype(w2_ref.dtype), w2_ref[...],
                            preferred_element_type=jnp.float32)

    # ---- last F chunk: bias2 + residual + LayerNorm fused epilogue (f32).
    @pl.when(j == pl.num_programs(1) - 1)
    def _finalize():
        out = acc_ref[...] + b2_ref[...].astype(jnp.float32) + y.astype(jnp.float32)
        inv_d = jnp.float32(1.0 / out.shape[-1])
        s1 = jnp.sum(out, axis=-1, keepdims=True)          # one-pass stats
        s2 = jnp.sum(out * out, axis=-1, keepdims=True)
        mu = s1 * inv_d
        var = s2 * inv_d - mu * mu
        outn = (out - mu) * jax.lax.rsqrt(var + eps)
        o_ref[...] = (outn * g_ref[...].astype(jnp.float32)
                      + beta_ref[...].astype(jnp.float32)).astype(o_ref.dtype)


# ------------------------------ Pallas wrapper ------------------------------ #

def _round_up(x, m):
    return ((x + m - 1) // m) * m


def _vmem_capacity_bytes():
    try:
        return int(pltpu.get_tpu_info().vmem_capacity_bytes)
    except Exception:
        return 64 << 20   # conservative fallback: v7x per-TC VMEM


def _footprint_bytes(tm, tf, d, in_b, out_b, w_b):
    """Rough VMEM footprint for one configuration (incl. double-buffering + temps)."""
    return (2 * tm * d * in_b              # y row tiles (double-buffered)
            + 2 * tm * d * out_b           # out row tiles (double-buffered)
            + 2 * (d * tf + tf * d) * w_b  # W1/W2 chunks (Pallas double-buffers)
            + 2 * (tf + 3 * d) * 4         # b1/b2/gamma/beta
            + tm * d * 4                   # f32 accumulator scratch
            + 2 * tm * tf * 4)             # hidden activation + epilogue temps


def transformer_block_b(y, params, *, eps=1e-5, block_m=None, block_f=None,
                        compute_dtype=jnp.bfloat16):
    """out = LayerNorm(fc2(ReLU(fc1(y))) + y); y: (..., dim)."""
    *lead, D = y.shape
    M = int(np.prod(lead)) if lead else 1
    y2 = y.reshape(M, D)

    w1, b1 = params["fc1_w"], params["fc1_b"]
    w2, b2 = params["fc2_w"], params["fc2_b"]
    gamma, beta = params["ln_g"], params["ln_b"]
    F = w1.shape[1]

    # Pre-cast the heavy matrices ONCE outside the kernel (perf review item #1).
    # Biases / gamma / beta stay in their original dtype — they are consumed in f32
    # inside the kernel anyway, so bf16-ing them would only lose precision.
    if compute_dtype is not None:
        w1 = w1.astype(compute_dtype)
        w2 = w2.astype(compute_dtype)

    in_b = jnp.dtype(y.dtype).itemsize
    w_b = jnp.dtype(w1.dtype).itemsize

    vmem_cap = _vmem_capacity_bytes()
    budget = int(0.70 * vmem_cap)

    # Row tile: taller on 128 MiB chips (v5e/v6e), 256 under v7x's 64 MiB.
    if block_m is None:
        block_m = 512 if vmem_cap > (96 << 20) else 256
    tm = min(block_m, _round_up(M, 8))

    # Hidden-dim tile: whole F if resident weights fit, else stream 128-multiples.
    if block_f is None:
        candidates = [F] + [c for c in (4096, 2048, 1024, 512, 256, 128)
                            if c < F and F % c == 0]
        tf = candidates[-1]
        for c in candidates:
            if _footprint_bytes(tm, c, D, in_b, in_b, w_b) <= budget:
                tf = c
                break
    else:
        tf = block_f

    # Pad rows so the grid covers M exactly (padded rows sliced off below).
    Mp = pl.cdiv(M, tm) * tm
    if Mp != M:
        y2 = jnp.pad(y2, ((0, Mp - M), (0, 0)))

    grid = (Mp // tm, F // tf)

    footprint = _footprint_bytes(tm, tf, D, in_b, in_b, w_b)
    headroom = max(8 << 20, vmem_cap // 6)          # compiler-internal scratch room
    vmem_limit = int(min(vmem_cap - headroom, max(2 * footprint, 32 << 20)))

    weight_bytes = 2 * D * F * w_b
    weight_passes = 1 if tf == F else grid[0]       # constant index_map => one fetch
    cost = pl.CostEstimate(
        flops=4 * M * D * F + 10 * M * D,           # two GEMMs + LN/elementwise
        transcendentals=M,                          # rsqrt per row
        bytes_accessed=2 * M * D * in_b + weight_passes * weight_bytes + (F + 3 * D) * 4,
    )

    out = pl.pallas_call(
        functools.partial(_mlp_ln_kernel, eps=eps),
        out_shape=jax.ShapeDtypeStruct((Mp, D), y.dtype),
        grid=grid,
        in_specs=[
            pl.BlockSpec((tm, D), lambda i, j: (i, 0)),   # y row tile (streamed)
            pl.BlockSpec((D, tf), lambda i, j: (0, j)),   # W1 chunk
            pl.BlockSpec((1, tf), lambda i, j: (0, j)),   # b1 chunk
            pl.BlockSpec((tf, D), lambda i, j: (j, 0)),   # W2 chunk
            pl.BlockSpec((1, D), lambda i, j: (0, 0)),    # b2
            pl.BlockSpec((1, D), lambda i, j: (0, 0)),    # gamma
            pl.BlockSpec((1, D), lambda i, j: (0, 0)),    # beta
        ],
        out_specs=pl.BlockSpec((tm, D), lambda i, j: (i, 0)),
        scratch_shapes=[pltpu.VMEM((tm, D), jnp.float32)],
        compiler_params=pltpu.CompilerParams(
            dimension_semantics=("parallel", "arbitrary"),
            vmem_limit_bytes=vmem_limit),
        cost_estimate=cost,
    )(y2, w1, b1, w2, b2, gamma, beta)

    if Mp != M:
        out = out[:M]
    return out.reshape(*lead, D)


# ---------------------------- Params / reference ---------------------------- #

def init_params(key, dim, dim_linear_block, dtype=jnp.float32):
    """Matches PyTorch nn.Linear default init: U(-1/sqrt(fan_in), 1/sqrt(fan_in))."""
    k1, k2, k3, k4 = jax.random.split(key, 4)
    bd1 = 1.0 / np.sqrt(dim)
    bd2 = 1.0 / np.sqrt(dim_linear_block)
    return {
        "fc1_w": jax.random.uniform(k1, (dim, dim_linear_block), dtype, -bd1, bd1),
        "fc1_b": jax.random.uniform(k2, (1, dim_linear_block), dtype, -bd1, bd1),
        "fc2_w": jax.random.uniform(k3, (dim_linear_block, dim), dtype, -bd2, bd2),
        "fc2_b": jax.random.uniform(k4, (1, dim), dtype, -bd2, bd2),
        "ln_g": jnp.ones((1, dim), dtype),
        "ln_b": jnp.zeros((1, dim), dtype),
    }


def reference(y, params, eps=1e-5):
    h = jnp.maximum(y @ params["fc1_w"] + params["fc1_b"][0], 0.0)
    out = h @ params["fc2_w"] + params["fc2_b"][0] + y
    mu = out.mean(-1, keepdims=True)
    var = ((out - mu) ** 2).mean(-1, keepdims=True)
    return (out - mu) / jnp.sqrt(var + eps) * params["ln_g"][0] + params["ln_b"][0]


# ----------------------------------- main ----------------------------------- #

if __name__ == "__main__":
    B, T, dim, dim_linear_block = 2, 8, 32, 64

    key = jax.random.PRNGKey(0)
    ky, kp = jax.random.split(key)
    y = jax.random.normal(ky, (B, T, dim), jnp.float32)
    params = init_params(kp, dim, dim_linear_block)

    ref = reference(y, params)

    # Exact f32 path: strict numerical check.
    fwd_f32 = jax.jit(functools.partial(transformer_block_b, compute_dtype=None))
    out_f32 = fwd_f32(y, params)
    jax.block_until_ready(out_f32)
    assert out_f32.shape == (B, T, dim)
    assert bool(jnp.all(jnp.isfinite(out_f32)))
    np.testing.assert_allclose(np.asarray(out_f32), np.asarray(ref), rtol=1e-4, atol=1e-4)

    # Default bf16 fast path (MXU-native operands, f32 accumulation): loose tolerance,
    # since bf16 GEMM operands deliberately trade precision for throughput.
    fwd_bf16 = jax.jit(transformer_block_b)
    out_bf16 = fwd_bf16(y, params)
    jax.block_until_ready(out_bf16)
    assert out_bf16.shape == (B, T, dim)
    assert bool(jnp.all(jnp.isfinite(out_bf16)))
    np.testing.assert_allclose(np.asarray(out_bf16), np.asarray(ref), rtol=5e-2, atol=5e-2)

    print("KERNEL_OK")
</pallas_src>

<mosaic_0001>
module attributes {stable_mosaic.version = 11 : i64} {
  func.func @_mlp_ln_kernel(%arg0: i32, %arg1: i32, %arg2: memref<16x32xf32, #tpu.memory_space<vmem>>, %arg3: memref<32x64xf32, #tpu.memory_space<vmem>>, %arg4: memref<1x64xf32, #tpu.memory_space<vmem>>, %arg5: memref<64x32xf32, #tpu.memory_space<vmem>>, %arg6: memref<1x32xf32, #tpu.memory_space<vmem>>, %arg7: memref<1x32xf32, #tpu.memory_space<vmem>>, %arg8: memref<1x32xf32, #tpu.memory_space<vmem>>, %arg9: memref<16x32xf32, #tpu.memory_space<vmem>>, %arg10: memref<16x32xf32, #tpu.memory_space<vmem>>) attributes {dimension_semantics = [#tpu.dimension_semantics<parallel>, #tpu.dimension_semantics<arbitrary>], iteration_bounds = array<i64: 1, 1>, scalar_prefetch = 0 : i64, scratch_operands = 1 : i64, tpu.core_type = #tpu.core_type<tc>, window_params = [{transform_indices = @transform_0, window_bounds = array<i64: 16, 32>}, {transform_indices = @transform_1, window_bounds = array<i64: 32, 64>}, {transform_indices = @transform_2, window_bounds = array<i64: 1, 64>}, {transform_indices = @transform_3, window_bounds = array<i64: 64, 32>}, {pipeline_mode = #tpu.pipeline_mode<synchronous>, transform_indices = @transform_4, window_bounds = array<i64: 1, 32>}, {pipeline_mode = #tpu.pipeline_mode<synchronous>, transform_indices = @transform_5, window_bounds = array<i64: 1, 32>}, {pipeline_mode = #tpu.pipeline_mode<synchronous>, transform_indices = @transform_6, window_bounds = array<i64: 1, 32>}, {transform_indices = @transform_7, window_bounds = array<i64: 16, 32>}]} {
    %c0_i32 = arith.constant 0 : i32
    %0 = arith.cmpi eq, %arg1, %c0_i32 : i32
    %1 = arith.extui %0 : i1 to i32
    %c0_i32_0 = arith.constant 0 : i32
    %2 = arith.cmpi ne, %1, %c0_i32_0 : i32
    scf.if %2 {
      %cst_16 = arith.constant 0.000000e+00 : f32
      %19 = vector.broadcast %cst_16 : f32 to vector<16x32xf32>
      %c0_17 = arith.constant 0 : index
      %c0_18 = arith.constant 0 : index
      %20 = vector.load %arg10[%c0_17, %c0_18] : memref<16x32xf32, #tpu.memory_space<vmem>>, vector<16x32xf32>
      tpu.vector_store %arg10[%c0_17, %c0_18], %19 {strides = array<i32>} : memref<16x32xf32, #tpu.memory_space<vmem>>, vector<16x32xf32>,
    } else {
    }
    %c0 = arith.constant 0 : index
    %c0_1 = arith.constant 0 : index
    %3 = vector.load %arg2[%c0, %c0_1] : memref<16x32xf32, #tpu.memory_space<vmem>>, vector<16x32xf32>
    %c0_2 = arith.constant 0 : index
    %c0_3 = arith.constant 0 : index
    %4 = vector.load %arg3[%c0_2, %c0_3] : memref<32x64xf32, #tpu.memory_space<vmem>>, vector<32x64xf32>
    %cst = arith.constant dense<0.000000e+00> : vector<16x64xf32>
    %5 = tpu.matmul %3, %4, %cst {dimension_numbers = #tpu.dot_dimension_numbers<[1], [0], [0], [1], [0, 0, 1, 1], [], []>} : vector<16x32xf32>, vector<32x64xf32>, vector<16x64xf32> -> vector<16x64xf32>
    %c0_4 = arith.constant 0 : index
    %c0_5 = arith.constant 0 : index
    %6 = vector.load %arg4[%c0_4, %c0_5] : memref<1x64xf32, #tpu.memory_space<vmem>>, vector<1x64xf32>
    %7 = vector.broadcast %6 : vector<1x64xf32> to vector<16x64xf32>
    %8 = arith.addf %5, %7 : vector<16x64xf32>
    %cst_6 = arith.constant 0.000000e+00 : f32
    %9 = vector.broadcast %cst_6 : f32 to vector<16x64xf32>
    %10 = arith.maximumf %8, %9 : vector<16x64xf32>
    %c0_7 = arith.constant 0 : index
    %c0_8 = arith.constant 0 : index
    %11 = vector.load %arg10[%c0_7, %c0_8] : memref<16x32xf32, #tpu.memory_space<vmem>>, vector<16x32xf32>
    %c0_9 = arith.constant 0 : index
    %c0_10 = arith.constant 0 : index
    %12 = vector.load %arg5[%c0_9, %c0_10] : memref<64x32xf32, #tpu.memory_space<vmem>>, vector<64x32xf32>
    %cst_11 = arith.constant dense<0.000000e+00> : vector<16x32xf32>
    %13 = tpu.matmul %10, %12, %cst_11 {dimension_numbers = #tpu.dot_dimension_numbers<[1], [0], [0], [1], [0, 0, 1, 1], [], []>} : vector<16x64xf32>, vector<64x32xf32>, vector<16x32xf32> -> vector<16x32xf32>
    %14 = arith.addf %11, %13 : vector<16x32xf32>
    %c0_12 = arith.constant 0 : index
    %c0_13 = arith.constant 0 : index
    %15 = vector.load %arg10[%c0_12, %c0_13] : memref<16x32xf32, #tpu.memory_space<vmem>>, vector<16x32xf32>
    tpu.vector_store %arg10[%c0_12, %c0_13], %14 {strides = array<i32>} : memref<16x32xf32, #tpu.memory_space<vmem>>, vector<16x32xf32>,
    %c0_i32_14 = arith.constant 0 : i32
    %16 = arith.cmpi eq, %arg1, %c0_i32_14 : i32
    %17 = arith.extui %16 : i1 to i32
    %c0_i32_15 = arith.constant 0 : i32
    %18 = arith.cmpi ne, %17, %c0_i32_15 : i32
    scf.if %18 {
      %c0_16 = arith.constant 0 : index
      %c0_17 = arith.constant 0 : index
      %19 = vector.load %arg10[%c0_16, %c0_17] : memref<16x32xf32, #tpu.memory_space<vmem>>, vector<16x32xf32>
      %c0_18 = arith.constant 0 : index
      %c0_19 = arith.constant 0 : index
      %20 = vector.load %arg6[%c0_18, %c0_19] : memref<1x32xf32, #tpu.memory_space<vmem>>, vector<1x32xf32>
      %21 = vector.broadcast %20 : vector<1x32xf32> to vector<16x32xf32>
      %22 = arith.addf %19, %21 : vector<16x32xf32>
      %23 = arith.addf %22, %3 : vector<16x32xf32>
      %cst_20 = arith.constant dense<0.000000e+00> : vector<16xf32>
      %24 = vector.multi_reduction <add>, %23, %cst_20 [1] : vector<16x32xf32> to vector<16xf32>
      %25 = vector.shape_cast %24 : vector<16xf32> to vector<16x1xf32>
      %26 = arith.mulf %23, %23 : vector<16x32xf32>
      %cst_21 = arith.constant dense<0.000000e+00> : vector<16xf32>
      %27 = vector.multi_reduction <add>, %26, %cst_21 [1] : vector<16x32xf32> to vector<16xf32>
      %28 = vector.shape_cast %27 : vector<16xf32> to vector<16x1xf32>
      %cst_22 = arith.constant 3.125000e-02 : f32
      %29 = vector.broadcast %cst_22 : f32 to vector<16x1xf32>
      %30 = arith.mulf %25, %29 : vector<16x1xf32>
      %cst_23 = arith.constant 3.125000e-02 : f32
      %31 = vector.broadcast %cst_23 : f32 to vector<16x1xf32>
      %32 = arith.mulf %28, %31 : vector<16x1xf32>
      %33 = arith.mulf %30, %30 : vector<16x1xf32>
      %34 = arith.subf %32, %33 : vector<16x1xf32>
      %35 = vector.broadcast %30 : vector<16x1xf32> to vector<16x32xf32>
      %36 = arith.subf %23, %35 : vector<16x32xf32>
      %cst_24 = arith.constant 9.99999974E-6 : f32
      %37 = vector.broadcast %cst_24 : f32 to vector<16x1xf32>
      %38 = arith.addf %34, %37 : vector<16x1xf32>
      %39 = math.rsqrt %38 : vector<16x1xf32>
      %40 = vector.broadcast %39 : vector<16x1xf32> to vector<16x32xf32>
      %41 = arith.mulf %36, %40 : vector<16x32xf32>
      %c0_25 = arith.constant 0 : index
      %c0_26 = arith.constant 0 : index
      %42 = vector.load %arg7[%c0_25, %c0_26] : memref<1x32xf32, #tpu.memory_space<vmem>>, vector<1x32xf32>
      %43 = vector.broadcast %42 : vector<1x32xf32> to vector<16x32xf32>
      %44 = arith.mulf %41, %43 : vector<16x32xf32>
      %c0_27 = arith.constant 0 : index
      %c0_28 = arith.constant 0 : index
      %45 = vector.load %arg8[%c0_27, %c0_28] : memref<1x32xf32, #tpu.memory_space<vmem>>, vector<1x32xf32>
      %46 = vector.broadcast %45 : vector<1x32xf32> to vector<16x32xf32>
      %47 = arith.addf %44, %46 : vector<16x32xf32>
      %c0_29 = arith.constant 0 : index
      %c0_30 = arith.constant 0 : index
      %48 = vector.load %arg9[%c0_29, %c0_30] : memref<16x32xf32, #tpu.memory_space<vmem>>, vector<16x32xf32>
      tpu.vector_store %arg9[%c0_29, %c0_30], %47 {strides = array<i32>} : memref<16x32xf32, #tpu.memory_space<vmem>>, vector<16x32xf32>,
    } else {
    }
    return
  }
  func.func @transform_0(%arg0: i32, %arg1: i32) -> (i32, i32) {
    %c0_i32 = arith.constant 0 : i32
    %c0_i32_0 = arith.constant 0 : i32
    return %arg0, %c0_i32 : i32, i32
  }
  func.func @transform_1(%arg0: i32, %arg1: i32) -> (i32, i32) {
    %c0_i32 = arith.constant 0 : i32
    %c0_i32_0 = arith.constant 0 : i32
    return %c0_i32, %arg1 : i32, i32
  }
  func.func @transform_2(%arg0: i32, %arg1: i32) -> (i32, i32) {
    %c0_i32 = arith.constant 0 : i32
    %c0_i32_0 = arith.constant 0 : i32
    return %c0_i32, %arg1 : i32, i32
  }
  func.func @transform_3(%arg0: i32, %arg1: i32) -> (i32, i32) {
    %c0_i32 = arith.constant 0 : i32
    %c0_i32_0 = arith.constant 0 : i32
    return %arg1, %c0_i32 : i32, i32
  }
  func.func @transform_4(%arg0: i32, %arg1: i32) -> (i32, i32) {
    %c0_i32 = arith.constant 0 : i32
    %c0_i32_0 = arith.constant 0 : i32
    %c0_i32_1 = arith.constant 0 : i32
    return %c0_i32, %c0_i32_0 : i32, i32
  }
  func.func @transform_5(%arg0: i32, %arg1: i32) -> (i32, i32) {
    %c0_i32 = arith.constant 0 : i32
    %c0_i32_0 = arith.constant 0 : i32
    %c0_i32_1 = arith.constant 0 : i32
    return %c0_i32, %c0_i32_0 : i32, i32
  }
  func.func @transform_6(%arg0: i32, %arg1: i32) -> (i32, i32) {
    %c0_i32 = arith.constant 0 : i32
    %c0_i32_0 = arith.constant 0 : i32
    %c0_i32_1 = arith.constant 0 : i32
    return %c0_i32, %c0_i32_0 : i32, i32
  }
  func.func @transform_7(%arg0: i32, %arg1: i32) -> (i32, i32) {
    %c0_i32 = arith.constant 0 : i32
    %c0_i32_0 = arith.constant 0 : i32
    return %arg0, %c0_i32 : i32, i32
  }
}

</mosaic_0001>

<bundles_post_ra>
// kernel: transformer_block_b.1
= control target key start
LH: loop header
LB: loop body
LE: loop exit
PB: predicated region body
PF: predicated region fallthrough
CT: control target
= control target key end

     0   :  { %vm31_vm0 = vcmask 261120   ;;  %s541_s0 = inlined_call_operand.vmem [shape: f32[16,32], index: 0, kind: input, shape index: {}]   ;;  %s542_s1 = inlined_call_operand.vmem [shape: f32[32,64], index: 1, kind: input, shape index: {}]   ;;  %s543_s2 = inlined_call_operand.vmem [shape: f32[1,64], index: 2, kind: input, shape index: {}]   ;;  %s544_s3 = inlined_call_operand.vmem [shape: f32[64,32], index: 3, kind: input, shape index: {}]   ;;  %s545_s4 = inlined_call_operand.vmem [shape: f32[1,32], index: 4, kind: input, shape index: {}]   ;;  %s546_s5 = inlined_call_operand.vmem [shape: f32[1,32], index: 5, kind: input, shape index: {}]   ;;  %s547_s6 = inlined_call_operand.vmem [shape: f32[1,32], index: 6, kind: input, shape index: {}]   ;;  %s548_s7 = inlined_call_operand.hbm [shape: f32[16,32], index: 7, kind: output, shape index: {}]  }
   0x1   :  { %v36_v0 = vld [vmem:[%s542_s1] sm:$0xff]  ;;  %v37_v1 = vld [vmem:[%s542_s1 + $0x8] sm:$0xff]  ;;  %v38_v2 = vld [vmem:[%s542_s1 + $0x10] sm:$0xff] }
   0x2   :  { %v363_v3 = vpack.c.bf16 %v37_v1, %v36_v0  ;;  %v39_v4 = vld [vmem:[%s542_s1 + $0x18] sm:$0xff]  ;;  %v34_v5 = vld [vmem:[%s541_s0] sm:$0xff]  ;;  %v134_v8 = vld [vmem:[%s544_s3 + $0x8] sm:$0xff] }
   0x3   :  { %v367_v6 = vpack.c.bf16 %v39_v4, %v38_v2  ;;  %341 = vmatprep.mubr.msk.f32.mxu0 %vm31_vm0, %v34_v5  ;;  %v133_v7 = vld [vmem:[%s544_s3] sm:$0xff]  ;;  %v135_v9 = vld [vmem:[%s544_s3 + $0x10] sm:$0xff]  ;;  %v136_v11 = vld [vmem:[%s544_s3 + $0x18] sm:$0xff] }
   0x4   :  { %364 = vmatprep.subr.bf16.mxu0 %v363_v3  ;;  %v371_v10 = vpack.c.bf16 %v134_v8, %v133_v7  ;;  %v375_v12 = vpack.c.bf16 %v136_v11, %v135_v9  ;;  %v137_v13 = vld [vmem:[%s544_s3 + $0x20] sm:$0xff]  ;;  %v138_v14 = vld [vmem:[%s544_s3 + $0x28] sm:$0xff] }
   0x5   :  { %366 = vmatpush3.bf16.msra.mxu0 %v363_v3 }
   0x6   :  { %12 = vsyncpa [#allocation4], 0  ;;  %368 = vmatprep.subr.bf16.mxu0 %v367_v6  ;;  %372 = vmatprep.subr.bf16.mxu1 %v371_v10  ;;  %v379_v15 = vpack.c.bf16 %v138_v14, %v137_v13  ;;  %v35_v16 = vld [vmem:[%s541_s0 + $0x8] sm:$0xff]  ;;  %v139_v17 = vld [vmem:[%s544_s3 + $0x30] sm:$0xff]  ;;  %v419_v20 = vmov 0.0   ;;  %vm141_vm1 = vcmask 523264  }
   0x7   :  { %374 = vmatpush3.bf16.msra.mxu1 %v371_v10  ;;  %v140_v18 = vld [vmem:[%s544_s3 + $0x38] sm:$0xff]  ;;  %33 = vst.msk [vmem:[#allocation2 + $0x8] sm:$0xff] %vm31_vm0, %v419_v20  ;;  %32 = vst.msk [vmem:[#allocation2] sm:$0xff] %vm31_vm0, %v419_v20  ;;  %v309_v21 = vld [vmem:[%s543_s2] ss:$0 sm:$0xff]  ;;  %s420_s9 = smov [#allocation3]  }
   0x8   :  { %376 = vmatprep.subr.bf16.mxu1 %v375_v12  ;;  %v383_v19 = vpack.c.bf16 %v140_v18, %v139_v17  ;;  %v314_v34 = vld [vmem:[%s545_s4] ss:$0 sm:$0xff]  ;;  %s298_s10 = sshll.u32 %s420_s9, 4  ;;  %s299_s10 = int_to_ptr.vmem [resolvable:$true] %s298_s10 }
   0x9   :  { %370 = vmatpush3.bf16.msra.mxu0 %v367_v6  ;;  %v315_v63 = vld [vmem:[%s546_s5] ss:$0 sm:$0xff]  ;;  %s395_s5 = scalar_lea.vmem %s299_s10, 256  ;;  %p400_p1 = scmp.lt.s32.totalorder %s299_s10, %s299_s10 }
   0xa   :  { %v316_v1 = vld [vmem:[%s547_s6] ss:$0 sm:$0xff]  ;;  %p396_p0 = scmp.ne.s32.totalorder %s299_s10, %s395_s5  ;;  %p401_p2 = scmp.lt.s32.totalorder %s395_s5, %s395_s5 }
   0xb   :  { %378 = vmatpush3.bf16.msra.mxu1 %v375_v12 }
   0xc   :  { %342 = vmatmul.mubr.msk.f32.vlgmr.msra.gmra.mrb[0].mxu0 %vm31_vm0, %v35_v16  ;;  %380 = vmatprep.subr.bf16.mxu1 %v379_v15  ;;  %p402_p3 = por %p401_p2, %p400_p1 }
   0xe   :  { %v132_v28 = vld [vmem:[#allocation2 + $0x8] sm:$0xff]  ;;  %v131_v29 = vld [vmem:[#allocation2] sm:$0xff]  ;;  %p403_p4 = pnand %p402_p3, %p396_p0 }
   0xf   :  { %382 = vmatpush3.bf16.msra.mxu1 %v379_v15 }
  0x10   :  { %384 = vmatprep.subr.bf16.mxu1 %v383_v19 }
  0x13   :  { %386 = vmatpush3.bf16.msra.mxu1 %v383_v19 }
  0xdf   :  { %v343_v22 = vpop.f32.mrb[0].mxu0 }
  0xe0   :  { %v126_v23 = vadd.f32 %v343_v22, %v309_v21  ;;  %v120_v24 = vpop.f32.mrb[1].mxu0 }
  0xe1   :  { %v121_v25 = vadd.f32 %v309_v21, %v120_v24 }
  0xe2   :  { %v130_v27 = vmax.f32 %v126_v23, 0.0 }
  0xe3   :  { %v129_v26 = vmax.f32 %v121_v25, 0.0 }
  0xe5   :  { %360 = vmatprep.mubr.msk.f32.mxu1 %vm141_vm1, %v129_v26 }
  0xe6   :  { %361 = vmatmul.mubr.msk.f32.vlgmr.msra.gmra.mrb[0].mxu1 %vm141_vm1, %v130_v27 }
 0x1b9   :  { %v362_v30 = vpop.f32.mrb[0].mxu1 }
 0x1ba   :  { %v224_v31 = vadd.f32 %v362_v30, %v132_v28  ;;  %v214_v32 = vpop.f32.mrb[1].mxu1 }
 0x1bb   :  { %v223_v33 = vadd.f32 %v214_v32, %v131_v29 }
 0x1bc   :  { %226 = vst.msk [vmem:[#allocation2 + $0x8] sm:$0xff] %vm31_vm0, %v224_v31 }
 0x1bd   :  { %225 = vst.msk [vmem:[#allocation2] sm:$0xff] %vm31_vm0, %v223_v33 }
 0x1c3   :  { %v231_v35 = vld [vmem:[#allocation2 + $0x8] sm:$0xff] }
 0x1c4   :  { %v230_v36 = vld [vmem:[#allocation2] sm:$0xff]  ;;  %v240_v37 = vadd.f32 %v314_v34, %v231_v35 }
 0x1c5   :  { %v239_v38 = vadd.f32 %v314_v34, %v230_v36 }
 0x1c6   :  { %v242_v40 = vadd.f32 %v240_v37, %v35_v16 }
 0x1c7   :  { %v241_v39 = vadd.f32 %v239_v38, %v34_v5 }
 0x1c8   :  { %v250_v44 = vmul.f32 %v242_v40, %v242_v40  ;;  %v246_v45 = vsel %vm31_vm0, %v242_v40, 0.0 }
 0x1c9   :  { %v243_v41 = vsel %vm31_vm0, %v241_v39, 0.0  ;;  %v249_v42 = vmul.f32 %v241_v39, %v241_v39 }
 0x1ca   :  { %244 = vadd.xlane.f32.xlu0 %v243_v41  ;;  %v254_v46 = vsel %vm31_vm0, %v250_v44, 0.0 }
 0x1cb   :  { %v251_v43 = vsel %vm31_vm0, %v249_v42, 0.0 }
 0x1cc   :  { %252 = vadd.xlane.f32.xlu1 %v251_v43 }
 0x1ce   :  { %247 = vadd.xlane.f32.xlu0 %v246_v45 }
 0x1d0   :  { %255 = vadd.xlane.f32.xlu1 %v254_v46 }
 0x257   :  { %v245_v47 = vpop.xlane.xlu0 %244 }
 0x258   :  { %v257_v48 = vmul.f32 0.03125, %v245_v47 }
 0x259   :  { %v253_v49 = vpop.xlane.xlu1 %252 }
 0x25a   :  { %v261_v50 = vmul.f32 %v257_v48, %v257_v48  ;;  %v259_v51 = vmul.f32 0.03125, %v253_v49  ;;  %v265_v61 = vsub.f32 %v241_v39, %v257_v48 }
 0x25b   :  { %v248_v52 = vpop.xlane.xlu0 %247 }
 0x25c   :  { %v263_v53 = vsub.f32 %v259_v51, %v261_v50  ;;  %v258_v54 = vmul.f32 0.03125, %v248_v52 }
 0x25d   :  { %v256_v55 = vpop.xlane.xlu1 %255 }
 0x25e   :  { %v267_v56 = vadd.f32 1e-05, %v263_v53  ;;  %v262_v57 = vmul.f32 %v258_v54, %v258_v54  ;;  %v260_v58 = vmul.f32 0.03125, %v256_v55  ;;  %v266_v2 = vsub.f32 %v242_v40, %v258_v54 }
 0x260   :  { %391 = vrsqrt.f32 %v267_v56  ;;  %v264_v59 = vsub.f32 %v260_v58, %v262_v57 }
 0x262   :  { %v268_v60 = vadd.f32 1e-05, %v264_v59 }
 0x264   :  { %393 = vrsqrt.f32 %v268_v60 }
 0x26a   :  { %v392_v62 = vpop.eup %391 }
 0x26b   :  { %v271_v0 = vmul.f32 %v392_v62, %v265_v61 }
 0x26d   :  { %v280_v3 = vmul.f32 %v315_v63, %v271_v0 }
 0x26e   :  { %v394_v4 = vpop.eup %393 }
 0x26f   :  { %v272_v5 = vmul.f32 %v394_v4, %v266_v2  ;;  %v289_v6 = vadd.f32 %v316_v1, %v280_v3 }
 0x271   :  { %v281_v7 = vmul.f32 %v315_v63, %v272_v5  ;;  %291 = vst.msk [vmem:[#allocation3] sm:$0xff] %vm31_vm0, %v289_v6 }
 0x273   :  { %v290_v8 = vadd.f32 %v316_v1, %v281_v7 }
 0x275   :  { %292 = vst.msk [vmem:[#allocation3 + $0x8] sm:$0xff] %vm31_vm0, %v290_v8 }
 0x276   :  { %406 = shalt.err (!%p403_p4)
}
 0x277   :  { %s407_s12 = scalar_lea.hbm %s548_s7, 256 }
 0x278   :  { %p408_p5 = scmp.ne.s32.totalorder %s548_s7, %s407_s12  ;;  %p411_p6 = scmp.lt.u32.totalorder %s407_s12, %s548_s7 }
 0x27a   :  { %p413_p7 = pnand %p411_p6, %p408_p5 }
 0x27c   :  { %416 = shalt.err (!%p413_p7)
}
 0x27d   :  { %s421_s1 = smov 128   ;;  %s422_s17 = smov 8  }
 0x27e   :  { %304 = dma.vmem_to_hbm [thread:$0]  %s299_s10, 256, %s548_s7, [#allocation4], %s421_s1, %s421_s1, %s422_s17  }
 0x27f   :  { %417 = dma.done.wait [#allocation4], 256  }
 0x280   :  { %418 = vsyncadd [#allocation4], 4294967040 }
 0x281   :  { %308 = vsyncpa [#allocation4], 1 }

</bundles_post_ra>
